<compile_context>
chip_gen: v7x
topology: tpu7x:2x2x1
jax: 0.10.0
libtpu: 0.0.40
codegen_flags: <defaults>
</compile_context>

<pallas_src>
import functools

import jax
import jax.numpy as jnp
import numpy as np
from jax import lax
from jax.experimental import pallas as pl
from jax.experimental.pallas import tpu as pltpu


def _stats_kernel(x_ref, s_ref, s2_ref, *, acc_w, chunks, sub_rows, unroll):
    """x_ref: (ROW_BLK, TILE) input block.
    s_ref / s2_ref: (ROW_BLK, acc_w) per-row-block accumulators (resident across
    the inner reduction grid axis)."""
    t = pl.program_id(1)

    @pl.when(t == 0)
    def _zero():
        s_ref[...] = jnp.zeros_like(s_ref)
        s2_ref[...] = jnp.zeros_like(s2_ref)

    row_blk = x_ref.shape[0]
    # Static loop over row sub-groups: bounds the register-resident working set
    # (accumulators <= 16 vregs) regardless of ROW_BLK; nothing is carried across
    # iterations except the VMEM-resident output refs.
    for r0 in range(0, row_blk, sub_rows):
        r1 = r0 + sub_rows
        if chunks == 1:
            xv = x_ref[r0:r1, :].astype(jnp.float32)
            s_ref[r0:r1, :] += xv
            s2_ref[r0:r1, :] += xv * xv
        else:
            def body(j, carry, r0=r0, r1=r1):
                s, s2 = carry
                start = pl.multiple_of(j * acc_w, 128)
                xv = x_ref[r0:r1, pl.ds(start, acc_w)].astype(jnp.float32)
                return s + xv, s2 + xv * xv

            zero = jnp.zeros((sub_rows, acc_w), jnp.float32)
            s, s2 = lax.fori_loop(0, chunks, body, (zero, zero), unroll=unroll)
            s_ref[r0:r1, :] += s
            s2_ref[r0:r1, :] += s2


_ROW_CAP = 256            # max rows per block (multiple of 8)
_TILE_CAP = 16384         # max lanes per block
_BLOCK_BUDGET = 2 << 20   # ~2 MiB input block (double-buffered by the pipeline)


def _largest_divisor(n, cap, step):
    """Largest multiple-of-`step` divisor of n that is <= cap (0 if none)."""
    d = (min(cap, n) // step) * step
    while d >= step:
        if n % d == 0:
            return d
        d -= step
    return 0


@jax.jit
def channel_mean_var(x):
    """x: (B, C, H, W). Returns (mean, var) of shape (C,), matching
    torch.mean(x, dim=[0,2,3]) and torch.var(x, dim=[0,2,3]) (unbiased, ddof=1)."""
    B, C, H, W = x.shape
    HW = H * W
    N = B * HW
    itemsize = jnp.dtype(x.dtype).itemsize

    # Fold batch into rows; pack spatial into rows only if needed to reach a
    # multiple of 8 sublanes.
    rows0 = B * C
    pack = 1
    if rows0 % 8 != 0:
        for p in (8, 4, 2):
            if HW % p == 0 and (rows0 * p) % 8 == 0:
                pack = p
                break
    rows = rows0 * pack
    L = HW // pack

    # Row block: largest multiple-of-8 divisor of rows (<= _ROW_CAP).
    row_blk = _largest_divisor(rows, _ROW_CAP, 8)
    if row_blk == 0:
        row_blk = rows  # full-extent block (legal even when not a multiple of 8)

    if row_blk * 128 * itemsize > (8 << 20):
        # Degenerate case: huge row count that is not a multiple of 8 — a single
        # block would blow VMEM; fall back to a plain XLA reduction.
        xf = x.astype(jnp.float32)
        mean = jnp.mean(xf, axis=(0, 2, 3))
        var = jnp.maximum(jnp.var(xf, axis=(0, 2, 3), ddof=1), 0.0)
        return mean, var

    # Row sub-group used for register-resident accumulation inside the kernel.
    if row_blk % 8 == 0:
        sub_rows = next(d for d in (32, 24, 16, 8) if row_blk % d == 0)
    else:
        sub_rows = row_blk

    x2 = x.reshape(rows, L)  # free view of contiguous NCHW

    if L < 128:
        # Whole row fits in one (full-extent) lane block.
        tile, n_tiles, l_main, acc_w, chunks = L, 1, L, L, 1
    else:
        l_main = (L // 128) * 128
        cap = max(128, min(_TILE_CAP,
                           (_BLOCK_BUDGET // (row_blk * itemsize)) // 128 * 128))
        tile = _largest_divisor(l_main, cap, 128) or 128
        n_tiles = l_main // tile
        # Accumulator lane width: aim for ~8 f32 vregs per accumulator so there
        # are enough independent VALU chains to hide add latency w/o spilling.
        row_groups = max(1, sub_rows // 8)
        acc_cap = 128 * max(1, min(tile // 128, 8 // row_groups))
        acc_w = _largest_divisor(tile, acc_cap, 128) or 128
        chunks = tile // acc_w
    unroll = max(1, min(4, chunks))
    tail = L - l_main
    n_row_blocks = rows // row_blk

    kernel = functools.partial(_stats_kernel, acc_w=acc_w, chunks=chunks,
                               sub_rows=sub_rows, unroll=unroll)

    s_acc, s2_acc = pl.pallas_call(
        kernel,
        out_shape=(
            jax.ShapeDtypeStruct((rows, acc_w), jnp.float32),
            jax.ShapeDtypeStruct((rows, acc_w), jnp.float32),
        ),
        grid_spec=pltpu.PrefetchScalarGridSpec(
            num_scalar_prefetch=0,
            grid=(n_row_blocks, n_tiles),
            in_specs=[pl.BlockSpec((row_blk, tile), lambda r, t: (r, t))],
            out_specs=(
                pl.BlockSpec((row_blk, acc_w), lambda r, t: (r, 0)),
                pl.BlockSpec((row_blk, acc_w), lambda r, t: (r, 0)),
            ),
        ),
        compiler_params=pltpu.CompilerParams(
            dimension_semantics=("parallel", "arbitrary"),
            vmem_limit_bytes=32 << 20,
        ),
    )(x2)

    # Tiny finalize: cross-lane sum, ragged-tail add, undo batch/pack folding.
    s_rows = jnp.sum(s_acc, axis=1)          # (rows,)
    s2_rows = jnp.sum(s2_acc, axis=1)        # (rows,)
    if tail > 0:
        xt = x2[:, l_main:].astype(jnp.float32)   # (rows, tail<128) — tiny
        s_rows = s_rows + jnp.sum(xt, axis=1)
        s2_rows = s2_rows + jnp.sum(xt * xt, axis=1)
    s_c = s_rows.reshape(B, C, pack).sum(axis=(0, 2))     # (C,)
    s2_c = s2_rows.reshape(B, C, pack).sum(axis=(0, 2))   # (C,)

    n = jnp.float32(N)
    mean = s_c / n
    var = jnp.maximum((s2_c - n * mean * mean) / (n - 1.0), 0.0)  # unbiased, >= 0
    return mean, var


class GetStats:
    """JAX/Pallas port of the PyTorch `get_stats` module.

    The per-channel mean/var reduction over dims [0,2,3] runs in the Pallas
    kernel; the stateful running-update arithmetic (faithfully reproducing the
    original formulas, including its `var ** 2` quirk) is host-side JAX glue.
    forward() returns x unchanged.
    """

    def __init__(self):
        self.samples = 0.0
        self.mean = []
        self.var = []

    def stat_out(self):
        return (self.mean, self.var)

    def reset(self):
        self.samples = 0.0
        self.mean = []
        self.var = []

    def forward(self, x):
        if self.samples == 0:
            self.mean, self.var = channel_mean_var(x)
            self.samples = x.shape[0]
        else:
            c_mean, c_var = channel_mean_var(x)
            c_samples = x.shape[0]
            all_samples = self.samples + c_samples
            self.var = (self.samples / all_samples * self.var ** 2
                        + c_samples / all_samples * c_var ** 2
                        + self.samples * c_samples / all_samples ** 2
                        * (self.mean - c_mean) ** 2)
            self.var = jnp.sqrt(self.var)
            self.mean = (self.samples / all_samples * self.mean
                         + c_samples / all_samples * c_mean)
            self.samples = all_samples
        return x

    __call__ = forward


if __name__ == "__main__":
    key = jax.random.PRNGKey(0)
    B, C, H, W = 2, 4, 16, 16
    k1, k2, k3 = jax.random.split(key, 3)
    x = jax.random.normal(k1, (B, C, H, W), dtype=jnp.float32)

    mod = GetStats()
    out = jax.block_until_ready(mod(x))
    mean, var = jax.tree.map(jax.block_until_ready, mod.stat_out())

    # First call: matches torch.mean / torch.var (unbiased) over dims [0,2,3].
    ref_mean = jnp.mean(x, axis=(0, 2, 3))
    ref_var = jnp.var(x, axis=(0, 2, 3), ddof=1)
    assert out.shape == x.shape and bool(jnp.all(out == x))
    assert np.allclose(np.asarray(mean), np.asarray(ref_mean), rtol=1e-5, atol=1e-5)
    assert np.allclose(np.asarray(var), np.asarray(ref_var), rtol=1e-4, atol=1e-5)

    # Second call: exercise the running-update path (same quirky formula as spec).
    x2 = 1.5 + 0.5 * jax.random.normal(k2, (B, C, H, W), dtype=jnp.float32)
    jax.block_until_ready(mod(x2))
    mean2, var2 = jax.tree.map(jax.block_until_ready, mod.stat_out())
    c_mean = jnp.mean(x2, axis=(0, 2, 3))
    c_var = jnp.var(x2, axis=(0, 2, 3), ddof=1)
    all_s = 2.0 * B
    ref_var2 = jnp.sqrt(B / all_s * ref_var ** 2 + B / all_s * c_var ** 2
                        + B * B / all_s ** 2 * (ref_mean - c_mean) ** 2)
    ref_mean2 = B / all_s * ref_mean + B / all_s * c_mean
    assert np.allclose(np.asarray(mean2), np.asarray(ref_mean2), rtol=1e-5, atol=1e-5)
    assert np.allclose(np.asarray(var2), np.asarray(ref_var2), rtol=1e-4, atol=1e-5)

    # Extra shapes: ragged spatial tail, sublane packing, multi-row-block path.
    for shape in ((2, 4, 14, 14), (2, 3, 14, 14), (8, 64, 8, 8)):
        xs = jax.random.normal(k3, shape, dtype=jnp.float32)
        m, v = jax.tree.map(jax.block_until_ready, channel_mean_var(xs))
        rm = jnp.mean(xs, axis=(0, 2, 3))
        rv = jnp.var(xs, axis=(0, 2, 3), ddof=1)
        assert np.allclose(np.asarray(m), np.asarray(rm), rtol=1e-5, atol=1e-5)
        assert np.allclose(np.asarray(v), np.asarray(rv), rtol=1e-4, atol=1e-5)

    print("KERNEL_OK")
</pallas_src>

<mosaic_0001>
module attributes {stable_mosaic.version = 11 : i64} {
  func.func @_stats_kernel(%arg0: i32, %arg1: i32, %arg2: memref<8x256xf32, #tpu.memory_space<vmem>>, %arg3: memref<8x256xf32, #tpu.memory_space<vmem>>, %arg4: memref<8x256xf32, #tpu.memory_space<vmem>>) attributes {dimension_semantics = [#tpu.dimension_semantics<parallel>, #tpu.dimension_semantics<arbitrary>], iteration_bounds = array<i64: 1, 1>, scalar_prefetch = 0 : i64, scratch_operands = 0 : i64, tpu.core_type = #tpu.core_type<tc>, window_params = [{transform_indices = @transform_0, window_bounds = array<i64: 8, 256>}, {transform_indices = @transform_1, window_bounds = array<i64: 8, 256>}, {transform_indices = @transform_2, window_bounds = array<i64: 8, 256>}]} {
    %c0_i32 = arith.constant 0 : i32
    %0 = arith.cmpi eq, %arg1, %c0_i32 : i32
    %1 = arith.extui %0 : i1 to i32
    %c0_i32_0 = arith.constant 0 : i32
    %2 = arith.cmpi ne, %1, %c0_i32_0 : i32
    scf.if %2 {
      %cst = arith.constant 0.000000e+00 : f32
      %11 = vector.broadcast %cst : f32 to vector<8x256xf32>
      %c0_10 = arith.constant 0 : index
      %c0_11 = arith.constant 0 : index
      %12 = vector.load %arg3[%c0_10, %c0_11] : memref<8x256xf32, #tpu.memory_space<vmem>>, vector<8x256xf32>
      tpu.vector_store %arg3[%c0_10, %c0_11], %11 {strides = array<i32>} : memref<8x256xf32, #tpu.memory_space<vmem>>, vector<8x256xf32>,
      %cst_12 = arith.constant 0.000000e+00 : f32
      %13 = vector.broadcast %cst_12 : f32 to vector<8x256xf32>
      %c0_13 = arith.constant 0 : index
      %c0_14 = arith.constant 0 : index
      %14 = vector.load %arg4[%c0_13, %c0_14] : memref<8x256xf32, #tpu.memory_space<vmem>>, vector<8x256xf32>
      tpu.vector_store %arg4[%c0_13, %c0_14], %13 {strides = array<i32>} : memref<8x256xf32, #tpu.memory_space<vmem>>, vector<8x256xf32>,
    } else {
    }
    %c0 = arith.constant 0 : index
    %c0_1 = arith.constant 0 : index
    %3 = vector.load %arg2[%c0, %c0_1] : memref<8x256xf32, #tpu.memory_space<vmem>>, vector<8x256xf32>
    %c0_2 = arith.constant 0 : index
    %c0_3 = arith.constant 0 : index
    %4 = vector.load %arg3[%c0_2, %c0_3] : memref<8x256xf32, #tpu.memory_space<vmem>>, vector<8x256xf32>
    %5 = arith.addf %4, %3 : vector<8x256xf32>
    %c0_4 = arith.constant 0 : index
    %c0_5 = arith.constant 0 : index
    %6 = vector.load %arg3[%c0_4, %c0_5] : memref<8x256xf32, #tpu.memory_space<vmem>>, vector<8x256xf32>
    tpu.vector_store %arg3[%c0_4, %c0_5], %5 {strides = array<i32>} : memref<8x256xf32, #tpu.memory_space<vmem>>, vector<8x256xf32>,
    %c0_6 = arith.constant 0 : index
    %c0_7 = arith.constant 0 : index
    %7 = vector.load %arg4[%c0_6, %c0_7] : memref<8x256xf32, #tpu.memory_space<vmem>>, vector<8x256xf32>
    %8 = arith.mulf %3, %3 : vector<8x256xf32>
    %9 = arith.addf %7, %8 : vector<8x256xf32>
    %c0_8 = arith.constant 0 : index
    %c0_9 = arith.constant 0 : index
    %10 = vector.load %arg4[%c0_8, %c0_9] : memref<8x256xf32, #tpu.memory_space<vmem>>, vector<8x256xf32>
    tpu.vector_store %arg4[%c0_8, %c0_9], %9 {strides = array<i32>} : memref<8x256xf32, #tpu.memory_space<vmem>>, vector<8x256xf32>,
    return
  }
  func.func @transform_0(%arg0: i32, %arg1: i32) -> (i32, i32) {
    %c0_i32 = arith.constant 0 : i32
    return %arg0, %arg1 : i32, i32
  }
  func.func @transform_1(%arg0: i32, %arg1: i32) -> (i32, i32) {
    %c0_i32 = arith.constant 0 : i32
    %c0_i32_0 = arith.constant 0 : i32
    return %arg0, %c0_i32 : i32, i32
  }
  func.func @transform_2(%arg0: i32, %arg1: i32) -> (i32, i32) {
    %c0_i32 = arith.constant 0 : i32
    %c0_i32_0 = arith.constant 0 : i32
    return %arg0, %c0_i32 : i32, i32
  }
}

</mosaic_0001>

<bundles_post_ra>
// kernel: channel_mean_var.1
= control target key start
LH: loop header
LB: loop body
LE: loop exit
PB: predicated region body
PF: predicated region fallthrough
CT: control target
= control target key end

     0   :  { %s76_s0 = inlined_call_operand.vmem [shape: f32[8,256], index: 0, kind: input, shape index: {}]   ;;  %s77_s1 = inlined_call_operand.vmem [shape: f32[8,256], index: 1, kind: output, shape index: {0}]   ;;  %s78_s2 = inlined_call_operand.vmem [shape: f32[8,256], index: 2, kind: output, shape index: {1}]  }
   0x1   :  { %v18_v0 = vld [vmem:[%s76_s0] sm:$0xff]  ;;  %v19_v1 = vld [vmem:[%s76_s0 + $0x8] sm:$0xff] }
   0x2   :  { %v28_v2 = vmul.f32 %v18_v0, %v18_v0  ;;  %v29_v3 = vmul.f32 %v19_v1, %v19_v1  ;;  %24 = vst [vmem:[%s77_s1] sm:$0xff] %v18_v0  ;;  %25 = vst [vmem:[%s77_s1 + $0x8] sm:$0xff] %v19_v1 }
   0x4   :  { %32 = vst [vmem:[%s78_s2] sm:$0xff] %v28_v2  ;;  %33 = vst [vmem:[%s78_s2 + $0x8] sm:$0xff] %v29_v3 }

</bundles_post_ra>
